<compile_context>
chip_gen: v7x
topology: tpu7x:2x2x1
jax: 0.10.0
libtpu: 0.0.40
codegen_flags: <defaults>
</compile_context>

<pallas_src>
import functools

import jax
import jax.numpy as jnp
from jax.experimental import pallas as pl
from jax.experimental.pallas import tpu as pltpu


def _make_ncf_kernel(num_mlp_layers, embedding_size, num_decks, num_cards):
    """Build a kernel closed over the static layer count / vocab sizes."""
    E = embedding_size

    def kernel(*refs):
        # ref ordering:
        #   deck_idx (1, TB) i32, card_idx (1, TB) i32,
        #   deck_table (2E, Vd) bf16, card_table (2E, Vc) bf16,
        #   w1_deck (L1, E), w1_card (L1, E), b1 (L1, 1),
        #   [w_k (Lk, Lk-1), b_k (Lk, 1)] for k = 2..num_mlp_layers,
        #   w_out_mlp (L_last, 1), b_out (1, 1) [SMEM],
        #   out (1, TB)
        it = iter(refs)
        didx_ref = next(it)
        cidx_ref = next(it)
        dtbl_ref = next(it)
        ctbl_ref = next(it)
        w1d_ref = next(it)
        w1c_ref = next(it)
        b1_ref = next(it)
        rest = [(next(it), next(it)) for _ in range(num_mlp_layers - 1)]
        wm_ref = next(it)
        bo_ref = next(it)
        out_ref = next(it)

        tb = didx_ref.shape[1]

        # Fused embedding gather: one-hot MXU matmul per entity.  The tables
        # are bf16 and the one-hot is 0/1, so with f32 accumulation the gather
        # is exact.  Result layout: features on sublanes, batch on lanes.
        didx = didx_ref[...]                                      # (1, TB) i32
        cidx = cidx_ref[...]
        d_iota = jax.lax.broadcasted_iota(jnp.int32, (num_decks, tb), 0)
        c_iota = jax.lax.broadcasted_iota(jnp.int32, (num_cards, tb), 0)
        d_onehot = jnp.where(d_iota == didx, 1.0, 0.0).astype(dtbl_ref.dtype)
        c_onehot = jnp.where(c_iota == cidx, 1.0, 0.0).astype(ctbl_ref.dtype)
        deck_act = jnp.dot(dtbl_ref[...], d_onehot,
                           preferred_element_type=jnp.float32)   # (2E, TB)
        card_act = jnp.dot(ctbl_ref[...], c_onehot,
                           preferred_element_type=jnp.float32)   # (2E, TB)

        # GMF branch.  The deck GMF rows were pre-scaled by w_out_gmf at init,
        # so the GMF contribution to the logit is a VPU multiply + sublane
        # reduce (no extra output-layer matmul, no concat).
        gmf_logit = jnp.sum(deck_act[:E, :] * card_act[:E, :],
                            axis=0, keepdims=True)               # (1, TB)

        # MLP branch.  First Linear is a split matmul over the two embedding
        # halves so concat([deck_mlp, card_mlp]) is never materialized.
        h = jnp.dot(w1d_ref[...], deck_act[E:, :],
                    preferred_element_type=jnp.float32)
        h = h + jnp.dot(w1c_ref[...], card_act[E:, :],
                        preferred_element_type=jnp.float32)
        h = jnp.maximum(h + b1_ref[...], 0.0)
        for w_ref, b_ref in rest:
            h = jnp.dot(w_ref[...], h, preferred_element_type=jnp.float32)
            h = jnp.maximum(h + b_ref[...], 0.0)
        # (nn.Dropout is identity at inference.)

        # Output Linear (out_features = 1): rank-1 weights -> VPU multiply +
        # sublane reduce -> lane-dense (1, TB) logit row (no masked stores).
        logits = gmf_logit + jnp.sum(h * wm_ref[...], axis=0, keepdims=True)
        logits = logits + bo_ref[0, 0]
        out_ref[...] = logits.astype(out_ref.dtype)

    return kernel


def init_ncf_params(key, num_decks, num_cards, embedding_size, mlp_layers):
    """Synthetic parameters stored directly in the layouts the kernel consumes.

    * Per-entity stacked (2E, vocab) embedding tables (rows 0:E = GMF,
      rows E:2E = MLP), stored bfloat16.  The deck GMF rows are pre-scaled by
      the output layer's GMF weights (exact reparameterization of the PyTorch
      output Linear).
    * Linear weights are PyTorch-style (out, in), which is exactly what the
      transposed (feature-on-sublane) kernel needs: h = W @ x_t + b.
    """
    E = embedding_size
    keys = jax.random.split(key, 6 + 2 * len(mlp_layers))
    deck_gmf = jax.random.normal(keys[0], (E, num_decks), jnp.float32) * 0.1
    card_gmf = jax.random.normal(keys[1], (E, num_cards), jnp.float32) * 0.1
    deck_mlp = jax.random.normal(keys[2], (E, num_decks), jnp.float32) * 0.1
    card_mlp = jax.random.normal(keys[3], (E, num_cards), jnp.float32) * 0.1

    in_size = 2 * E
    ki = 4
    w_list, b_list = [], []
    for out_size in mlp_layers:
        w = jax.random.normal(keys[ki], (out_size, in_size), jnp.float32) / jnp.sqrt(
            float(in_size))
        b = jax.random.normal(keys[ki + 1], (out_size, 1), jnp.float32) * 0.01
        w_list.append(w)
        b_list.append(b)
        ki += 2
        in_size = out_size

    out_in = E + mlp_layers[-1]
    w_out = jax.random.normal(keys[ki], (1, out_in), jnp.float32) / jnp.sqrt(
        float(out_in))
    b_out = jax.random.normal(keys[ki + 1], (1, 1), jnp.float32) * 0.01
    w_out_gmf = w_out[:, :E].T            # (E, 1)
    w_out_mlp = w_out[:, E:].T            # (L_last, 1)

    p = {}
    p["deck_table"] = jnp.concatenate(
        [deck_gmf * w_out_gmf, deck_mlp], axis=0).astype(jnp.bfloat16)  # (2E, Vd)
    p["card_table"] = jnp.concatenate(
        [card_gmf, card_mlp], axis=0).astype(jnp.bfloat16)              # (2E, Vc)
    p["mlp_w1_deck"] = w_list[0][:, :E]   # (L1, E)
    p["mlp_w1_card"] = w_list[0][:, E:]   # (L1, E)
    p["mlp_w_rest"] = w_list[1:]
    p["mlp_b"] = b_list
    p["w_out_mlp"] = w_out_mlp            # (L_last, 1)
    p["b_out"] = b_out                    # (1, 1) scalar -> SMEM
    return p


def _round_up(x, m):
    return ((x + m - 1) // m) * m


@functools.partial(jax.jit, static_argnames=("block_rows",))
def ncf_forward(params, deck_indices, card_indices, *, block_rows=8192):
    batch = deck_indices.shape[0]
    deck_table = params["deck_table"]
    card_table = params["card_table"]
    two_e, num_decks = deck_table.shape
    num_cards = card_table.shape[1]
    E = two_e // 2
    num_layers = len(params["mlp_b"])

    # Lane-dense batch tile (multiple of 128), capped at block_rows.  Target
    # >= 2 tiles for large batches so both v7x TensorCores get work under
    # dimension_semantics=("parallel",).  Per-tile VMEM (intermediates at
    # TB=8192 ~ a few MiB) stays under the v5e 16 MiB scoped default.
    half = (batch + 1) // 2
    tb = int(min(_round_up(block_rows, 128), max(128, _round_up(half, 128))))
    num_tiles = int(pl.cdiv(batch, tb))
    b_pad = num_tiles * tb

    didx = deck_indices.astype(jnp.int32)
    cidx = card_indices.astype(jnp.int32)
    if b_pad != batch:
        # Padded lanes gather row 0 and produce garbage logits that are sliced
        # off below (harmless for forward).
        didx = jnp.pad(didx, (0, b_pad - batch))
        cidx = jnp.pad(cidx, (0, b_pad - batch))
    didx = didx.reshape(1, b_pad)
    cidx = cidx.reshape(1, b_pad)

    def act_spec():
        # (1, tb) lane-dense int32 index row, pipelined over the batch grid.
        return pl.BlockSpec((1, tb), lambda i: (0, i))

    def resident(arr):
        # Whole array, constant block index -> stays resident in VMEM.
        return pl.BlockSpec(arr.shape, lambda i: (0, 0))

    inputs = [didx, cidx, deck_table, card_table,
              params["mlp_w1_deck"], params["mlp_w1_card"], params["mlp_b"][0]]
    in_specs = [act_spec(), act_spec(),
                resident(deck_table), resident(card_table),
                resident(params["mlp_w1_deck"]),
                resident(params["mlp_w1_card"]),
                resident(params["mlp_b"][0])]
    for k in range(1, num_layers):
        w, b = params["mlp_w_rest"][k - 1], params["mlp_b"][k]
        inputs += [w, b]
        in_specs += [resident(w), resident(b)]
    inputs += [params["w_out_mlp"], params["b_out"]]
    in_specs += [
        resident(params["w_out_mlp"]),
        pl.BlockSpec(memory_space=pltpu.MemorySpace.SMEM),   # scalar output bias
    ]

    out = pl.pallas_call(
        _make_ncf_kernel(num_layers, E, num_decks, num_cards),
        out_shape=jax.ShapeDtypeStruct((1, b_pad), jnp.float32),
        grid=(num_tiles,),
        in_specs=in_specs,
        out_specs=pl.BlockSpec((1, tb), lambda i: (0, i)),
        compiler_params=pltpu.CompilerParams(
            dimension_semantics=("parallel",)),
    )(*inputs)

    logits = out[0, :batch]
    # squeeze() like the PyTorch module (scalar when batch == 1).
    return jnp.squeeze(logits)


def ncf_reference(params, deck_indices, card_indices):
    """Pure-JAX reference (f32, HIGHEST precision) of the same forward math."""
    hp = jax.lax.Precision.HIGHEST
    E = params["deck_table"].shape[0] // 2
    dtab = params["deck_table"].astype(jnp.float32)
    ctab = params["card_table"].astype(jnp.float32)
    d = jnp.take(dtab, deck_indices, axis=1)      # (2E, B)
    c = jnp.take(ctab, card_indices, axis=1)      # (2E, B)
    gmf_logit = jnp.sum(d[:E] * c[:E], axis=0)    # w_out_gmf folded into table
    h = (jnp.dot(params["mlp_w1_deck"], d[E:], precision=hp)
         + jnp.dot(params["mlp_w1_card"], c[E:], precision=hp)
         + params["mlp_b"][0])
    h = jnp.maximum(h, 0.0)
    for w, b in zip(params["mlp_w_rest"], params["mlp_b"][1:]):
        h = jnp.maximum(jnp.dot(w, h, precision=hp) + b, 0.0)
    logits = (gmf_logit
              + jnp.sum(params["w_out_mlp"] * h, axis=0)
              + params["b_out"][0, 0])
    return jnp.squeeze(logits)


if __name__ == "__main__":
    # Small shapes consistent with the module.
    num_decks = 32
    num_cards = 64
    embedding_size = 16
    mlp_layers = (32, 16)
    batch = 8

    key = jax.random.PRNGKey(0)
    pkey, dkey, ckey = jax.random.split(key, 3)
    params = init_ncf_params(pkey, num_decks, num_cards, embedding_size,
                             list(mlp_layers))

    deck_indices = jax.random.randint(dkey, (batch,), 0, num_decks, dtype=jnp.int32)
    card_indices = jax.random.randint(ckey, (batch,), 0, num_cards, dtype=jnp.int32)

    out = jax.block_until_ready(ncf_forward(params, deck_indices, card_indices))
    ref = ncf_reference(params, deck_indices, card_indices)

    assert out.shape == (batch,), out.shape
    assert jnp.allclose(out, ref, atol=1e-3, rtol=1e-3), (out, ref)

    print("KERNEL_OK")
</pallas_src>

<mosaic_0001>
module attributes {stable_mosaic.version = 11 : i64} {
  func.func @kernel(%arg0: i32, %arg1: memref<1x128xi32, #tpu.memory_space<vmem>>, %arg2: memref<1x128xi32, #tpu.memory_space<vmem>>, %arg3: memref<32x32xbf16, #tpu.memory_space<vmem>>, %arg4: memref<32x64xbf16, #tpu.memory_space<vmem>>, %arg5: memref<32x16xf32, #tpu.memory_space<vmem>>, %arg6: memref<32x16xf32, #tpu.memory_space<vmem>>, %arg7: memref<32x1xf32, #tpu.memory_space<vmem>>, %arg8: memref<16x32xf32, #tpu.memory_space<vmem>>, %arg9: memref<16x1xf32, #tpu.memory_space<vmem>>, %arg10: memref<16x1xf32, #tpu.memory_space<vmem>>, %arg11: memref<1x1xf32, #tpu.memory_space<smem>>, %arg12: memref<1x128xf32, #tpu.memory_space<vmem>>) attributes {dimension_semantics = [#tpu.dimension_semantics<parallel>], iteration_bounds = array<i64: 1>, scalar_prefetch = 0 : i64, scratch_operands = 0 : i64, tpu.core_type = #tpu.core_type<tc>, window_params = [{transform_indices = @transform_0, window_bounds = array<i64: 1, 128>}, {transform_indices = @transform_1, window_bounds = array<i64: 1, 128>}, {pipeline_mode = #tpu.pipeline_mode<synchronous>, transform_indices = @transform_2, window_bounds = array<i64: 32, 32>}, {pipeline_mode = #tpu.pipeline_mode<synchronous>, transform_indices = @transform_3, window_bounds = array<i64: 32, 64>}, {pipeline_mode = #tpu.pipeline_mode<synchronous>, transform_indices = @transform_4, window_bounds = array<i64: 32, 16>}, {pipeline_mode = #tpu.pipeline_mode<synchronous>, transform_indices = @transform_5, window_bounds = array<i64: 32, 16>}, {pipeline_mode = #tpu.pipeline_mode<synchronous>, transform_indices = @transform_6, window_bounds = array<i64: 32, 1>}, {pipeline_mode = #tpu.pipeline_mode<synchronous>, transform_indices = @transform_7, window_bounds = array<i64: 16, 32>}, {pipeline_mode = #tpu.pipeline_mode<synchronous>, transform_indices = @transform_8, window_bounds = array<i64: 16, 1>}, {pipeline_mode = #tpu.pipeline_mode<synchronous>, transform_indices = @transform_9, window_bounds = array<i64: 16, 1>}, {transform_indices = @transform_10, window_bounds = array<i64: 1, 1>}, {transform_indices = @transform_11, window_bounds = array<i64: 1, 128>}]} {
    %c0 = arith.constant 0 : index
    %c0_0 = arith.constant 0 : index
    %0 = vector.load %arg1[%c0, %c0_0] : memref<1x128xi32, #tpu.memory_space<vmem>>, vector<1x128xi32>
    %c0_1 = arith.constant 0 : index
    %c0_2 = arith.constant 0 : index
    %1 = vector.load %arg2[%c0_1, %c0_2] : memref<1x128xi32, #tpu.memory_space<vmem>>, vector<1x128xi32>
    %2 = tpu.iota {dimensions = array<i32: 0>} : vector<32x128xi32>
    %3 = tpu.iota {dimensions = array<i32: 0>} : vector<64x128xi32>
    %4 = vector.broadcast %0 : vector<1x128xi32> to vector<32x128xi32>
    %5 = arith.cmpi eq, %2, %4 : vector<32x128xi32>
    %cst = arith.constant 1.000000e+00 : f32
    %cst_3 = arith.constant 0.000000e+00 : f32
    %6 = vector.broadcast %cst : f32 to vector<32x128xf32>
    %7 = vector.broadcast %cst_3 : f32 to vector<32x128xf32>
    %8 = arith.select %5, %6, %7 : vector<32x128xi1>, vector<32x128xf32>
    %9 = arith.truncf %8 : vector<32x128xf32> to vector<32x128xbf16>
    %10 = vector.broadcast %1 : vector<1x128xi32> to vector<64x128xi32>
    %11 = arith.cmpi eq, %3, %10 : vector<64x128xi32>
    %cst_4 = arith.constant 1.000000e+00 : f32
    %cst_5 = arith.constant 0.000000e+00 : f32
    %12 = vector.broadcast %cst_4 : f32 to vector<64x128xf32>
    %13 = vector.broadcast %cst_5 : f32 to vector<64x128xf32>
    %14 = arith.select %11, %12, %13 : vector<64x128xi1>, vector<64x128xf32>
    %15 = arith.truncf %14 : vector<64x128xf32> to vector<64x128xbf16>
    %c0_6 = arith.constant 0 : index
    %c0_7 = arith.constant 0 : index
    %16 = vector.load %arg3[%c0_6, %c0_7] : memref<32x32xbf16, #tpu.memory_space<vmem>>, vector<32x32xbf16>
    %cst_8 = arith.constant dense<0.000000e+00> : vector<32x128xf32>
    %17 = tpu.matmul %16, %9, %cst_8 {dimension_numbers = #tpu.dot_dimension_numbers<[1], [0], [0], [1], [0, 0, 1, 1], [], []>} : vector<32x32xbf16>, vector<32x128xbf16>, vector<32x128xf32> -> vector<32x128xf32>
    %c0_9 = arith.constant 0 : index
    %c0_10 = arith.constant 0 : index
    %18 = vector.load %arg4[%c0_9, %c0_10] : memref<32x64xbf16, #tpu.memory_space<vmem>>, vector<32x64xbf16>
    %cst_11 = arith.constant dense<0.000000e+00> : vector<32x128xf32>
    %19 = tpu.matmul %18, %15, %cst_11 {dimension_numbers = #tpu.dot_dimension_numbers<[1], [0], [0], [1], [0, 0, 1, 1], [], []>} : vector<32x64xbf16>, vector<64x128xbf16>, vector<32x128xf32> -> vector<32x128xf32>
    %20 = vector.extract_strided_slice %17 {offsets = [0, 0], sizes = [16, 128], strides = [1, 1]} : vector<32x128xf32> to vector<16x128xf32>
    %21 = vector.extract_strided_slice %19 {offsets = [0, 0], sizes = [16, 128], strides = [1, 1]} : vector<32x128xf32> to vector<16x128xf32>
    %22 = arith.mulf %20, %21 : vector<16x128xf32>
    %cst_12 = arith.constant dense<0.000000e+00> : vector<128xf32>
    %23 = vector.multi_reduction <add>, %22, %cst_12 [0] : vector<16x128xf32> to vector<128xf32>
    %24 = vector.shape_cast %23 : vector<128xf32> to vector<1x128xf32>
    %c0_13 = arith.constant 0 : index
    %c0_14 = arith.constant 0 : index
    %25 = vector.load %arg5[%c0_13, %c0_14] : memref<32x16xf32, #tpu.memory_space<vmem>>, vector<32x16xf32>
    %26 = vector.extract_strided_slice %17 {offsets = [16, 0], sizes = [16, 128], strides = [1, 1]} : vector<32x128xf32> to vector<16x128xf32>
    %cst_15 = arith.constant dense<0.000000e+00> : vector<32x128xf32>
    %27 = tpu.matmul %25, %26, %cst_15 {dimension_numbers = #tpu.dot_dimension_numbers<[1], [0], [0], [1], [0, 0, 1, 1], [], []>} : vector<32x16xf32>, vector<16x128xf32>, vector<32x128xf32> -> vector<32x128xf32>
    %c0_16 = arith.constant 0 : index
    %c0_17 = arith.constant 0 : index
    %28 = vector.load %arg6[%c0_16, %c0_17] : memref<32x16xf32, #tpu.memory_space<vmem>>, vector<32x16xf32>
    %29 = vector.extract_strided_slice %19 {offsets = [16, 0], sizes = [16, 128], strides = [1, 1]} : vector<32x128xf32> to vector<16x128xf32>
    %cst_18 = arith.constant dense<0.000000e+00> : vector<32x128xf32>
    %30 = tpu.matmul %28, %29, %cst_18 {dimension_numbers = #tpu.dot_dimension_numbers<[1], [0], [0], [1], [0, 0, 1, 1], [], []>} : vector<32x16xf32>, vector<16x128xf32>, vector<32x128xf32> -> vector<32x128xf32>
    %31 = arith.addf %27, %30 : vector<32x128xf32>
    %c0_19 = arith.constant 0 : index
    %c0_20 = arith.constant 0 : index
    %32 = vector.load %arg7[%c0_19, %c0_20] : memref<32x1xf32, #tpu.memory_space<vmem>>, vector<32x1xf32>
    %33 = vector.broadcast %32 : vector<32x1xf32> to vector<32x128xf32>
    %34 = arith.addf %31, %33 : vector<32x128xf32>
    %cst_21 = arith.constant 0.000000e+00 : f32
    %35 = vector.broadcast %cst_21 : f32 to vector<32x128xf32>
    %36 = arith.maximumf %34, %35 : vector<32x128xf32>
    %c0_22 = arith.constant 0 : index
    %c0_23 = arith.constant 0 : index
    %37 = vector.load %arg8[%c0_22, %c0_23] : memref<16x32xf32, #tpu.memory_space<vmem>>, vector<16x32xf32>
    %cst_24 = arith.constant dense<0.000000e+00> : vector<16x128xf32>
    %38 = tpu.matmul %37, %36, %cst_24 {dimension_numbers = #tpu.dot_dimension_numbers<[1], [0], [0], [1], [0, 0, 1, 1], [], []>} : vector<16x32xf32>, vector<32x128xf32>, vector<16x128xf32> -> vector<16x128xf32>
    %c0_25 = arith.constant 0 : index
    %c0_26 = arith.constant 0 : index
    %39 = vector.load %arg9[%c0_25, %c0_26] : memref<16x1xf32, #tpu.memory_space<vmem>>, vector<16x1xf32>
    %40 = vector.broadcast %39 : vector<16x1xf32> to vector<16x128xf32>
    %41 = arith.addf %38, %40 : vector<16x128xf32>
    %cst_27 = arith.constant 0.000000e+00 : f32
    %42 = vector.broadcast %cst_27 : f32 to vector<16x128xf32>
    %43 = arith.maximumf %41, %42 : vector<16x128xf32>
    %c0_28 = arith.constant 0 : index
    %c0_29 = arith.constant 0 : index
    %44 = vector.load %arg10[%c0_28, %c0_29] : memref<16x1xf32, #tpu.memory_space<vmem>>, vector<16x1xf32>
    %45 = vector.broadcast %44 : vector<16x1xf32> to vector<16x128xf32>
    %46 = arith.mulf %43, %45 : vector<16x128xf32>
    %cst_30 = arith.constant dense<0.000000e+00> : vector<128xf32>
    %47 = vector.multi_reduction <add>, %46, %cst_30 [0] : vector<16x128xf32> to vector<128xf32>
    %48 = vector.shape_cast %47 : vector<128xf32> to vector<1x128xf32>
    %49 = arith.addf %24, %48 : vector<1x128xf32>
    %c0_31 = arith.constant 0 : index
    %c0_32 = arith.constant 0 : index
    %50 = memref.load %arg11[%c0_31, %c0_32] : memref<1x1xf32, #tpu.memory_space<smem>>
    %51 = vector.broadcast %50 : f32 to vector<1x128xf32>
    %52 = arith.addf %49, %51 : vector<1x128xf32>
    %c0_33 = arith.constant 0 : index
    %c0_34 = arith.constant 0 : index
    %53 = vector.load %arg12[%c0_33, %c0_34] : memref<1x128xf32, #tpu.memory_space<vmem>>, vector<1x128xf32>
    tpu.vector_store %arg12[%c0_33, %c0_34], %52 {strides = array<i32>} : memref<1x128xf32, #tpu.memory_space<vmem>>, vector<1x128xf32>,
    return
  }
  func.func @transform_0(%arg0: i32) -> (i32, i32) {
    %c0_i32 = arith.constant 0 : i32
    %c0_i32_0 = arith.constant 0 : i32
    return %c0_i32, %arg0 : i32, i32
  }
  func.func @transform_1(%arg0: i32) -> (i32, i32) {
    %c0_i32 = arith.constant 0 : i32
    %c0_i32_0 = arith.constant 0 : i32
    return %c0_i32, %arg0 : i32, i32
  }
  func.func @transform_2(%arg0: i32) -> (i32, i32) {
    %c0_i32 = arith.constant 0 : i32
    %c0_i32_0 = arith.constant 0 : i32
    %c0_i32_1 = arith.constant 0 : i32
    return %c0_i32, %c0_i32_0 : i32, i32
  }
  func.func @transform_3(%arg0: i32) -> (i32, i32) {
    %c0_i32 = arith.constant 0 : i32
    %c0_i32_0 = arith.constant 0 : i32
    %c0_i32_1 = arith.constant 0 : i32
    return %c0_i32, %c0_i32_0 : i32, i32
  }
  func.func @transform_4(%arg0: i32) -> (i32, i32) {
    %c0_i32 = arith.constant 0 : i32
    %c0_i32_0 = arith.constant 0 : i32
    %c0_i32_1 = arith.constant 0 : i32
    return %c0_i32, %c0_i32_0 : i32, i32
  }
  func.func @transform_5(%arg0: i32) -> (i32, i32) {
    %c0_i32 = arith.constant 0 : i32
    %c0_i32_0 = arith.constant 0 : i32
    %c0_i32_1 = arith.constant 0 : i32
    return %c0_i32, %c0_i32_0 : i32, i32
  }
  func.func @transform_6(%arg0: i32) -> (i32, i32) {
    %c0_i32 = arith.constant 0 : i32
    %c0_i32_0 = arith.constant 0 : i32
    %c0_i32_1 = arith.constant 0 : i32
    return %c0_i32, %c0_i32_0 : i32, i32
  }
  func.func @transform_7(%arg0: i32) -> (i32, i32) {
    %c0_i32 = arith.constant 0 : i32
    %c0_i32_0 = arith.constant 0 : i32
    %c0_i32_1 = arith.constant 0 : i32
    return %c0_i32, %c0_i32_0 : i32, i32
  }
  func.func @transform_8(%arg0: i32) -> (i32, i32) {
    %c0_i32 = arith.constant 0 : i32
    %c0_i32_0 = arith.constant 0 : i32
    %c0_i32_1 = arith.constant 0 : i32
    return %c0_i32, %c0_i32_0 : i32, i32
  }
  func.func @transform_9(%arg0: i32) -> (i32, i32) {
    %c0_i32 = arith.constant 0 : i32
    %c0_i32_0 = arith.constant 0 : i32
    %c0_i32_1 = arith.constant 0 : i32
    return %c0_i32, %c0_i32_0 : i32, i32
  }
  func.func @transform_10(%arg0: i32) -> (i32, i32) {
    %c0_i32 = arith.constant 0 : i32
    %c0_i32_0 = arith.constant 0 : i32
    %c0_i32_1 = arith.constant 0 : i32
    return %c0_i32, %c0_i32_0 : i32, i32
  }
  func.func @transform_11(%arg0: i32) -> (i32, i32) {
    %c0_i32 = arith.constant 0 : i32
    %c0_i32_0 = arith.constant 0 : i32
    return %c0_i32, %arg0 : i32, i32
  }
}

</mosaic_0001>

<bundles_post_ra>
// kernel: ncf_forward.1
= control target key start
LH: loop header
LB: loop body
LE: loop exit
PB: predicated region body
PF: predicated region fallthrough
CT: control target
= control target key end

     0   :  { %v42_v0 = vlaneseq  ;;  %vm907_vm0 = vcmask 261120   ;;  %vm906_vm1 = vcmask 523264   ;;  %v739_v11 = vmov 1.0|1.0   ;;  %s894_s1 = inlined_call_operand.vmem [shape: s32[1,128], index: 1, kind: input, shape index: {}]   ;;  %s895_s0 = inlined_call_operand.vmem [shape: s32[1,128], index: 0, kind: input, shape index: {}]   ;;  %s896_s2 = inlined_call_operand.vmem [shape: bf16[32,32], index: 2, kind: input, shape index: {}]   ;;  %s897_s3 = inlined_call_operand.vmem [shape: bf16[32,64], index: 3, kind: input, shape index: {}]   ;;  %s898_s5 = inlined_call_operand.vmem [shape: f32[32,16], index: 5, kind: input, shape index: {}]   ;;  %s899_s6 = inlined_call_operand.vmem [shape: f32[32,1], index: 6, kind: input, shape index: {}]   ;;  %s900_s8 = inlined_call_operand.vmem [shape: f32[16,1], index: 8, kind: input, shape index: {}]   ;;  %s901_s9 = inlined_call_operand.vmem [shape: f32[16,1], index: 9, kind: input, shape index: {}]   ;;  %s902_s4 = inlined_call_operand.vmem [shape: f32[32,16], index: 4, kind: input, shape index: {}]   ;;  %s903_s7 = inlined_call_operand.vmem [shape: f32[16,32], index: 7, kind: input, shape index: {}]   ;;  %s904_s10 = inlined_call_operand.<no memory space> [shape: f32[1,1], index: 10, kind: input, shape index: {}]   ;;  %s905_s11 = inlined_call_operand.vmem [shape: f32[1,128], index: 11, kind: output, shape index: {}]  }
   0x1   :  { %v601_v1 = vld [vmem:[%s894_s1] ss:$0 sm:$0xff]  ;;  %v737_v14 = vld [vmem:[%s896_s2 + $0x8] sm:$0xff]   ;;  %v740_v17 = vmov 0   ;;  %v443_v19 = vld [vmem:[%s899_s6 + $0x10] sm:$0xff] }
   0x2   :  { %v600_v2 = vld [vmem:[%s895_s0] ss:$0 sm:$0xff]  ;;  %v43_v3 = vshrl.u32 %v42_v0, 7  ;;  %v738_v15 = vld [vmem:[%s897_s3 + $0x8] sm:$0xff]   ;;  %733 = vset.pattern.permute.xlu0 %v740_v17  ;;  %734 = vset.pattern.permute.xlu1 %v740_v17  ;;  %v444_v21 = vld [vmem:[%s899_s6 + $0x18] sm:$0xff] }
   0x3   :  { %v735_v4 = vld [vmem:[%s896_s2] sm:$0xff]   ;;  %457 = vperm.xlu1 %734, %v443_v19   ;;  %v442_v20 = vld [vmem:[%s899_s6 + $0x8] sm:$0xff]  ;;  %v244_v40 = vld [vmem:[%s898_s5 + $0x10] sm:$0xff] }
   0x4   :  { %v736_v5 = vld [vmem:[%s897_s3] sm:$0xff]   ;;  %v44_v6 = vadd.s32 8, %v43_v3  ;;  %vm69_vm2 = vcmp.eq.s32.totalorder %v43_v3, %v601_v1  ;;  %v45_v7 = vadd.s32 16, %v43_v3  ;;  %v46_v8 = vadd.s32 24, %v43_v3  ;;  %664 = vmatprep.mubr.msk.bf16.mxu0 %vm907_vm0, %v735_v4  ;;  %v476_v23 = vld [vmem:[%s900_s8 + $0x8] sm:$0xff]  ;;  %v245_v41 = vld [vmem:[%s898_s5 + $0x18] sm:$0xff] }
   0x5   :  { %vm55_vm3 = vcmp.eq.s32.totalorder %v43_v3, %v600_v2  ;;  %v47_v9 = vadd.s32 32, %v43_v3  ;;  %v48_v10 = vadd.s32 40, %v43_v3  ;;  %676 = vmatprep.mubr.msk.bf16.mxu1 %vm906_vm1, %v736_v5  ;;  %v49_v12 = vadd.s32 48, %v43_v3  ;;  %v242_v16 = vld [vmem:[%s898_s5] sm:$0xff]  ;;  %v571_v25 = vld [vmem:[%s901_s9 + $0x8] sm:$0xff]  ;;  %v240_v44 = vld [vmem:[%s902_s4 + $0x10] sm:$0xff] }
   0x6   :  { %vm70_vm4 = vcmp.eq.s32.totalorder %v44_v6, %v601_v1  ;;  %vm71_vm5 = vcmp.eq.s32.totalorder %v45_v7, %v601_v1  ;;  %vm72_vm6 = vcmp.eq.s32.totalorder %v46_v8, %v601_v1  ;;  %vm56_vm7 = vcmp.eq.s32.totalorder %v44_v6, %v600_v2  ;;  %v441_v18 = vld [vmem:[%s899_s6] sm:$0xff]  ;;  %v243_v39 = vld [vmem:[%s898_s5 + $0x8] sm:$0xff]  ;;  %v241_v45 = vld [vmem:[%s902_s4 + $0x18] sm:$0xff] }
   0x7   :  { %vm612_vm8 = vmpackc.low %vm70_vm4, %vm69_vm2  ;;  %vm73_vm9 = vcmp.eq.s32.totalorder %v47_v9, %v601_v1  ;;  %vm74_vm10 = vcmp.eq.s32.totalorder %v48_v10, %v601_v1  ;;  %vm57_vm12 = vcmp.eq.s32.totalorder %v45_v7, %v600_v2  ;;  %vm58_vm13 = vcmp.eq.s32.totalorder %v46_v8, %v600_v2  ;;  %447 = vperm.xlu0 %733, %v441_v18   ;;  %v475_v22 = vld [vmem:[%s900_s8] sm:$0xff]  ;;  %v239_v43 = vld [vmem:[%s902_s4 + $0x8] sm:$0xff] }
   0x8   :  { %668 = vmatprep.subr.msk.bf16.mxu1 %vm612_vm8, %v739_v11  ;;  %vm614_vm11 = vmpackc.low %vm72_vm6, %vm71_vm5  ;;  %v50_v13 = vadd.s32 56, %v43_v3  ;;  %vm75_vm0 = vcmp.eq.s32.totalorder %v49_v12, %v601_v1  ;;  %vm908_vm5 = vcmask 261120   ;;  %vm246_vm6 = vcmask 130048   ;;  %462 = vperm.xlu1 %734, %v444_v21   ;;  %v570_v24 = vld [vmem:[%s901_s9] sm:$0xff] }
   0x9   :  { %669 = vmatpush3.bf16.msk.msra.mxu1 %vm612_vm8, %v739_v11  ;;  %vm604_vm14 = vmpackc.low %vm56_vm7, %vm55_vm3  ;;  %vm909_vm3 = vcmask 523264   ;;  %v238_v42 = vld [vmem:[%s902_s4] sm:$0xff] }
   0xa   :  { %670 = vmatprep.subr.msk.bf16.mxu1 %vm614_vm11, %v739_v11  ;;  %660 = vmatprep.subr.msk.bf16.mxu0 %vm604_vm14, %v739_v11  ;;  %vm616_vm15 = vmpackc.low %vm74_vm10, %vm73_vm9  ;;  %vm76_vm2 = vcmp.eq.s32.totalorder %v50_v13, %v601_v1  ;;  %v473_v46 = vld [vmem:[%s903_s7] sm:$0xff]  ;;  %v474_v1 = vld [vmem:[%s903_s7 + $0x8] sm:$0xff] }
   0xb   :  { %661 = vmatpush3.bf16.msk.msra.mxu0 %vm604_vm14, %v739_v11  ;;  %vm606_vm1 = vmpackc.low %vm58_vm13, %vm57_vm12  ;;  %452 = vperm.xlu0 %733, %v442_v20  }
   0xc   :  { %662 = vmatprep.subr.msk.bf16.mxu0 %vm606_vm1, %v739_v11  ;;  %vm618_vm4 = vmpackc.low %vm76_vm2, %vm75_vm0  ;;  %484 = vperm.xlu1 %734, %v476_v23  }
   0xd   :  { %671 = vmatpush3.bf16.msk.msra.mxu1 %vm614_vm11, %v739_v11  ;;  %vm910_vm0 = vmmov %vm908_vm5 }
   0xe   :  { %672 = vmatprep.subr.msk.bf16.mxu1 %vm616_vm15, %v739_v11 }
   0xf   :  { %663 = vmatpush3.bf16.msk.msra.mxu0 %vm606_vm1, %v739_v11  ;;  %479 = vperm.xlu0 %733, %v475_v22   ;;  %vm911_vm1 = vmmov %vm910_vm0 }
  0x10   :  { %579 = vperm.xlu1 %734, %v571_v25  }
  0x11   :  { %673 = vmatpush3.bf16.msk.msra.mxu1 %vm616_vm15, %v739_v11 }
  0x12   :  { %674 = vmatprep.subr.msk.bf16.mxu1 %vm618_vm4, %v739_v11  ;;  %665 = vmatmul.mubr.msk.bf16.vlgmr.msra.gmra.mrb[0].mxu0 %vm908_vm5, %v737_v14 }
  0x13   :  { %684 = vmatprep.mubr.msk.f32.mxu0 %vm246_vm6, %v242_v16  ;;  %574 = vperm.xlu0 %733, %v570_v24  }
  0x15   :  { %675 = vmatpush3.bf16.msk.msra.mxu1 %vm618_vm4, %v739_v11 }
  0x18   :  { %677 = vmatmul.mubr.msk.bf16.vlgmr.msra.gmra.mrb[0].mxu1 %vm909_vm3, %v738_v15 }
  0x19   :  { %708 = vmatprep.mubr.msk.f32.mxu1 %vm910_vm0, %v473_v46 }
  0x82   :  { %v458_v48 = vpop.permute.xlu1 %457 }
  0x86   :  { %v448_v47 = vpop.permute.xlu0 %447 }
  0x87   :  { %v463_v55 = vpop.permute.xlu1 %462 }
  0x8a   :  { %v453_v49 = vpop.permute.xlu0 %452 }
  0x8b   :  { %v485_v2 = vpop.permute.xlu1 %484 }
  0x8e   :  { %v480_v3 = vpop.permute.xlu0 %479 }
  0x8f   :  { %v580_v11 = vpop.permute.xlu1 %579 }
  0x92   :  { %v575_v13 = vpop.permute.xlu0 %574 }
  0xe5   :  { %v666_v26 = vpop.f32.mrb[0].mxu0 }
  0xe6   :  { %v144_v27 = vpop.f32.mrb[1].mxu0 }
  0xe7   :  { %v667_v28 = vpop.f32.mrb[2].mxu0 }
  0xe8   :  { %v715_v29 = vpack.c.bf16 %v667_v28, %v666_v26  ;;  %v147_v30 = vpop.f32.mrb[3].mxu0 }
  0xeb   :  { %v678_v31 = vpop.f32.mrb[0].mxu1 }
  0xec   :  { %v214_v32 = vpop.f32.mrb[1].mxu1 }
  0xed   :  { %v229_v33 = vmul.f32 %v214_v32, %v144_v27  ;;  %v679_v34 = vpop.f32.mrb[2].mxu1  ;;  %v593_v27 = vstv %s904_s10 }
  0xee   :  { %v711_v35 = vpack.c.bf16 %v679_v34, %v678_v31  ;;  %v217_v36 = vpop.f32.mrb[3].mxu1 }
  0xef   :  { %v230_v37 = vmul.f32 %v217_v36, %v147_v30 }
  0xf0   :  { %712 = vmatprep.subr.bf16.mxu0 %v711_v35 }
  0xf1   :  { %v231_v38 = vadd.f32 %v230_v37, %v229_v33  ;;  %714 = vmatpush3.bf16.msra.mxu0 %v711_v35 }
  0xf2   :  { %716 = vmatprep.subr.bf16.mxu0 %v715_v29 }
  0xf3   :  { %v232_v4 = vrot.slane %v231_v38, 4 }
  0xf4   :  { %685 = vmatmul.mubr.msk.f32.vlgmr.msra.gmra.mrb[4].mxu0 %vm246_vm6, %v243_v39 }
  0xf5   :  { %718 = vmatpush3.bf16.msra.mxu0 %v715_v29  ;;  %687 = vmatprep.mubr.msk.f32.mxu0 %vm246_vm6, %v244_v40  ;;  %v233_v10 = vadd.f32 %v232_v4, %v231_v38 }
  0xf7   :  { %v234_v16 = vrot.slane %v233_v10, 2 }
  0xf8   :  { %688 = vmatmul.mubr.msk.f32.gmra.mrb[6].mxu0 %vm246_vm6, %v245_v41 }
  0xf9   :  { %694 = vmatprep.mubr.msk.f32.mxu0 %vm246_vm6, %v238_v42  ;;  %v235_v19 = vadd.f32 %v234_v16, %v233_v10 }
  0xfb   :  { %v236_v22 = vrot.slane %v235_v19, 1 }
  0xfc   :  { %695 = vmatmul.mubr.msk.f32.vlgmr.msra.gmra.mrb[4].mxu0 %vm246_vm6, %v239_v43 }
  0xfd   :  { %697 = vmatprep.mubr.msk.f32.mxu0 %vm246_vm6, %v240_v44  ;;  %v237_v25 = vadd.f32 %v236_v22, %v235_v19 }
 0x100   :  { %698 = vmatmul.mubr.msk.f32.gmra.mrb[6].mxu0 %vm246_vm6, %v241_v45 }
 0x1cf   :  { %v696_v50 = vpop.f32.mrb[4].mxu0 }
 0x1d0   :  { %v466_v51 = vadd.f32 %v696_v50, %v453_v49  ;;  %v422_v52 = vpop.f32.mrb[5].mxu0 }
 0x1d1   :  { %v465_v53 = vadd.f32 %v448_v47, %v422_v52 }
 0x1d2   :  { %v470_v54 = vmax.f32 %v466_v51, 0.0 }
 0x1d3   :  { %v469_v56 = vmax.f32 %v465_v53, 0.0  ;;  %v699_v57 = vpop.f32.mrb[6].mxu0 }
 0x1d4   :  { %v468_v58 = vadd.f32 %v699_v57, %v463_v55  ;;  %v432_v59 = vpop.f32.mrb[7].mxu0 }
 0x1d5   :  { %v719_v60 = vpack.c.bf16 %v470_v54, %v469_v56  ;;  %v467_v61 = vadd.f32 %v458_v48, %v432_v59 }
 0x1d6   :  { %v472_v62 = vmax.f32 %v468_v58, 0.0 }
 0x1d7   :  { %v471_v63 = vmax.f32 %v467_v61, 0.0  ;;  %720 = vmatprep.subr.bf16.mxu1 %v719_v60 }
 0x1d8   :  { %722 = vmatpush3.bf16.msra.mxu1 %v719_v60 }
 0x1d9   :  { %v723_v0 = vpack.c.bf16 %v472_v62, %v471_v63 }
 0x1db   :  { %724 = vmatprep.subr.bf16.mxu1 %v723_v0 }
 0x1dc   :  { %726 = vmatpush3.bf16.msra.mxu1 %v723_v0 }
 0x1df   :  { %709 = vmatmul.mubr.msk.f32.vlgmr.msra.gmra.mrb[4].mxu1 %vm911_vm1, %v474_v1 }
 0x2b2   :  { %v710_v5 = vpop.f32.mrb[4].mxu1 }
 0x2b3   :  { %v565_v6 = vadd.f32 %v710_v5, %v485_v2  ;;  %v559_v7 = vpop.f32.mrb[5].mxu1 }
 0x2b4   :  { %v560_v8 = vadd.f32 %v559_v7, %v480_v3 }
 0x2b5   :  { %v569_v9 = vmax.f32 %v565_v6, 0.0 }
 0x2b6   :  { %v568_v12 = vmax.f32 %v560_v8, 0.0 }
 0x2b7   :  { %v583_v14 = vmul.f32 %v580_v11, %v569_v9 }
 0x2b8   :  { %v582_v15 = vmul.f32 %v575_v13, %v568_v12 }
 0x2ba   :  { %v584_v17 = vadd.f32 %v583_v14, %v582_v15 }
 0x2bc   :  { %v585_v18 = vrot.slane %v584_v17, 4 }
 0x2be   :  { %v586_v20 = vadd.f32 %v585_v18, %v584_v17 }
 0x2c0   :  { %v587_v21 = vrot.slane %v586_v20, 2 }
 0x2c2   :  { %v588_v23 = vadd.f32 %v587_v21, %v586_v20 }
 0x2c4   :  { %v589_v24 = vrot.slane %v588_v23, 1 }
 0x2c6   :  { %v590_v26 = vadd.f32 %v589_v24, %v588_v23 }
 0x2c8   :  { %v591_v28 = vadd.f32 %v590_v26, %v237_v25 }
 0x2ca   :  { %v594_v29 = vadd.f32 %v593_v27, %v591_v28 }
 0x2cc   :  { %595 = vst [vmem:[%s905_s11] sm:$0x1] %v594_v29 }

</bundles_post_ra>
